<compile_context>
chip_gen: v7x
topology: tpu7x:2x2x1
jax: 0.10.0
libtpu: 0.0.40
codegen_flags: <defaults>
</compile_context>

<pallas_src>
import functools
import math

import jax
import jax.numpy as jnp
import numpy as np
from jax.experimental import pallas as pl
from jax.experimental.pallas import tpu as pltpu


# ---------------------------------------------------------------------------
# Path 1: zero-copy identity (output aliased to the donated input buffer).
# ---------------------------------------------------------------------------
def _identity_alias_kernel(x_ref, o_ref):
    # Output is aliased to the input: nothing to compute, nothing to move.
    # (No pltpu.touch -- it has no discharge rule; the alias is sufficient.)
    del x_ref, o_ref


@functools.partial(jax.jit, donate_argnums=0)
def identity(x):
    """Identity forward pass as a zero-copy Pallas TPU kernel.

    The input buffer is donated and aliased to the output, so zero HBM bytes
    move on any TPU generation (v5e / v6e / v7x).
    """
    return pl.pallas_call(
        _identity_alias_kernel,
        out_shape=jax.ShapeDtypeStruct(x.shape, x.dtype),
        in_specs=[pl.BlockSpec(memory_space=pl.ANY)],
        out_specs=pl.BlockSpec(memory_space=pl.ANY),
        input_output_aliases={0: 0},
        cost_estimate=pl.CostEstimate(
            flops=0, transcendentals=0, bytes_accessed=0),
    )(x)


# ---------------------------------------------------------------------------
# Path 2: explicit tiled copy fallback (for non-donatable inputs).
# ---------------------------------------------------------------------------
def _copy_kernel(x_ref, o_ref):
    o_ref[...] = x_ref[...]


def identity_copy(x, *, target_block_bytes=8 * 1024 * 1024):
    """Out-of-place identity: lane-dense, row-tiled HBM->VMEM->HBM copy."""
    if x.ndim == 0:
        x2 = x.reshape(1, 1)
    elif x.ndim == 1:
        x2 = x.reshape(1, x.shape[0])
    else:
        x2 = x.reshape(math.prod(x.shape[:-1]), x.shape[-1])
    rows, cols = x2.shape

    # Row tile sized so double-buffered blocks stay far below v7x's 64 MiB VMEM.
    bytes_per_row = max(1, cols * x2.dtype.itemsize)
    tile_rows = max(1, min(rows, target_block_bytes // bytes_per_row))
    if tile_rows < rows:  # partial tiling: keep the sublane dim 8-aligned
        tile_rows = max(8, (tile_rows // 8) * 8)

    out = pl.pallas_call(
        _copy_kernel,
        out_shape=jax.ShapeDtypeStruct((rows, cols), x2.dtype),
        grid=(pl.cdiv(rows, tile_rows),),
        in_specs=[pl.BlockSpec((tile_rows, cols), lambda i: (i, 0))],
        out_specs=pl.BlockSpec((tile_rows, cols), lambda i: (i, 0)),
        compiler_params=pltpu.CompilerParams(
            dimension_semantics=("parallel",),  # shards across v7x's 2 TCs
            vmem_limit_bytes=48 * 1024 * 1024,
        ),
        cost_estimate=pl.CostEstimate(
            flops=0, transcendentals=0,
            bytes_accessed=2 * x.size * x2.dtype.itemsize),
    )(x2)
    return out.reshape(x.shape)


if __name__ == "__main__":
    key = jax.random.PRNGKey(0)
    # Small NCHW-style input: batch=2, C=4, H=W=16.
    x = jax.random.normal(key, (2, 4, 16, 16), dtype=jnp.float32)
    expected = np.asarray(x)  # host copy: x itself is donated to identity() below

    # Fallback tiled-copy path (non-donated input) -- run before x is donated.
    y_copy = jax.block_until_ready(identity_copy(x))
    assert y_copy.shape == x.shape and y_copy.dtype == x.dtype
    assert np.array_equal(np.asarray(y_copy), expected)

    # Primary zero-copy path (donates x; compare against the saved host copy).
    y = jax.block_until_ready(identity(x))
    assert y.shape == expected.shape
    assert y.dtype == expected.dtype
    assert np.array_equal(np.asarray(y), expected)

    print("KERNEL_OK")
</pallas_src>

<mosaic_0001>
module attributes {stable_mosaic.version = 11 : i64} {
  func.func @_copy_kernel(%arg0: i32, %arg1: memref<128x16xf32, #tpu.memory_space<vmem>>, %arg2: memref<128x16xf32, #tpu.memory_space<vmem>>) attributes {dimension_semantics = [#tpu.dimension_semantics<parallel>], iteration_bounds = array<i64: 1>, scalar_prefetch = 0 : i64, scratch_operands = 0 : i64, tpu.core_type = #tpu.core_type<tc>, window_params = [{transform_indices = @transform_0, window_bounds = array<i64: 128, 16>}, {transform_indices = @transform_1, window_bounds = array<i64: 128, 16>}]} {
    %c0 = arith.constant 0 : index
    %c0_0 = arith.constant 0 : index
    %0 = vector.load %arg1[%c0, %c0_0] : memref<128x16xf32, #tpu.memory_space<vmem>>, vector<128x16xf32>
    %c0_1 = arith.constant 0 : index
    %c0_2 = arith.constant 0 : index
    %1 = vector.load %arg2[%c0_1, %c0_2] : memref<128x16xf32, #tpu.memory_space<vmem>>, vector<128x16xf32>
    tpu.vector_store %arg2[%c0_1, %c0_2], %0 {strides = array<i32>} : memref<128x16xf32, #tpu.memory_space<vmem>>, vector<128x16xf32>,
    return
  }
  func.func @transform_0(%arg0: i32) -> (i32, i32) {
    %c0_i32 = arith.constant 0 : i32
    %c0_i32_0 = arith.constant 0 : i32
    return %arg0, %c0_i32 : i32, i32
  }
  func.func @transform_1(%arg0: i32) -> (i32, i32) {
    %c0_i32 = arith.constant 0 : i32
    %c0_i32_0 = arith.constant 0 : i32
    return %arg0, %c0_i32 : i32, i32
  }
}

</mosaic_0001>

<bundles_post_ra>
// kernel: tpu_custom_call.1
= control target key start
LH: loop header
LB: loop body
LE: loop exit
PB: predicated region body
PF: predicated region fallthrough
CT: control target
= control target key end

     0   :  { %vm24_vm0 = vcmask 130048   ;;  %s167_s0 = inlined_call_operand.vmem [shape: f32[128,16], index: 0, kind: input, shape index: {}]   ;;  %s168_s1 = inlined_call_operand.vmem [shape: f32[128,16], index: 1, kind: output, shape index: {}]  }
   0x1   :  { %v8_v0 = vld [vmem:[%s167_s0] sm:$0xff]  ;;  %v9_v1 = vld [vmem:[%s167_s0 + $0x8] sm:$0xff]  ;;  %v10_v2 = vld [vmem:[%s167_s0 + $0x10] sm:$0xff] }
   0x2   :  { %25 = vst.msk [vmem:[%s168_s1] sm:$0xff] %vm24_vm0, %v8_v0  ;;  %26 = vst.msk [vmem:[%s168_s1 + $0x8] sm:$0xff] %vm24_vm0, %v9_v1  ;;  %v11_v3 = vld [vmem:[%s167_s0 + $0x18] sm:$0xff]  ;;  %v12_v4 = vld [vmem:[%s167_s0 + $0x20] sm:$0xff] }
   0x3   :  { %27 = vst.msk [vmem:[%s168_s1 + $0x10] sm:$0xff] %vm24_vm0, %v10_v2  ;;  %v13_v5 = vld [vmem:[%s167_s0 + $0x28] sm:$0xff]  ;;  %28 = vst.msk [vmem:[%s168_s1 + $0x18] sm:$0xff] %vm24_vm0, %v11_v3  ;;  %v14_v6 = vld [vmem:[%s167_s0 + $0x30] sm:$0xff] }
   0x4   :  { %29 = vst.msk [vmem:[%s168_s1 + $0x20] sm:$0xff] %vm24_vm0, %v12_v4  ;;  %30 = vst.msk [vmem:[%s168_s1 + $0x28] sm:$0xff] %vm24_vm0, %v13_v5  ;;  %v15_v7 = vld [vmem:[%s167_s0 + $0x38] sm:$0xff]  ;;  %v16_v8 = vld [vmem:[%s167_s0 + $0x40] sm:$0xff] }
   0x5   :  { %31 = vst.msk [vmem:[%s168_s1 + $0x30] sm:$0xff] %vm24_vm0, %v14_v6  ;;  %32 = vst.msk [vmem:[%s168_s1 + $0x38] sm:$0xff] %vm24_vm0, %v15_v7  ;;  %v17_v9 = vld [vmem:[%s167_s0 + $0x48] sm:$0xff]  ;;  %v18_v10 = vld [vmem:[%s167_s0 + $0x50] sm:$0xff] }
   0x6   :  { %33 = vst.msk [vmem:[%s168_s1 + $0x40] sm:$0xff] %vm24_vm0, %v16_v8  ;;  %v19_v11 = vld [vmem:[%s167_s0 + $0x58] sm:$0xff]  ;;  %34 = vst.msk [vmem:[%s168_s1 + $0x48] sm:$0xff] %vm24_vm0, %v17_v9  ;;  %v20_v12 = vld [vmem:[%s167_s0 + $0x60] sm:$0xff] }
   0x7   :  { %35 = vst.msk [vmem:[%s168_s1 + $0x50] sm:$0xff] %vm24_vm0, %v18_v10  ;;  %36 = vst.msk [vmem:[%s168_s1 + $0x58] sm:$0xff] %vm24_vm0, %v19_v11  ;;  %v21_v13 = vld [vmem:[%s167_s0 + $0x68] sm:$0xff]  ;;  %v22_v14 = vld [vmem:[%s167_s0 + $0x70] sm:$0xff] }
   0x8   :  { %37 = vst.msk [vmem:[%s168_s1 + $0x60] sm:$0xff] %vm24_vm0, %v20_v12  ;;  %38 = vst.msk [vmem:[%s168_s1 + $0x68] sm:$0xff] %vm24_vm0, %v21_v13  ;;  %v23_v15 = vld [vmem:[%s167_s0 + $0x78] sm:$0xff] }
   0x9   :  { %39 = vst.msk [vmem:[%s168_s1 + $0x70] sm:$0xff] %vm24_vm0, %v22_v14  ;;  %40 = vst.msk [vmem:[%s168_s1 + $0x78] sm:$0xff] %vm24_vm0, %v23_v15 }

</bundles_post_ra>
